<compile_context>
chip_gen: v6e
topology: v6e:2x2x1
jax: 0.10.0
libtpu: 0.0.40
codegen_flags: <defaults>
</compile_context>

<pallas_src>
import functools

import jax
import jax.numpy as jnp
from jax.experimental import pallas as pl
from jax.experimental.pallas import tpu as pltpu

_VMEM_LIMIT = 32 * 1024 * 1024   # safe on v5e/v6e (128 MiB) and v7x (64 MiB physical)
_FUSED_MAX_N = 1024              # bf16 A_hat <= 2 MiB -> keep fully resident


def _round_up(v, m):
    return ((v + m - 1) // m) * m


def _pad2(a, rows, cols):
    return jnp.pad(a, ((0, rows - a.shape[0]), (0, cols - a.shape[1])))


# --------------------------- tiled per-layer path ---------------------------

def _xw_kernel(x_ref, w_ref, o_ref):
    # XW = X @ W, computed once per row tile (not re-done per A-row tile).
    o_ref[...] = jnp.dot(x_ref[...], w_ref[...],
                         preferred_element_type=jnp.float32).astype(o_ref.dtype)


def xw_matmul(x, w, *, tm):
    n_pad, f_dim = x.shape
    h_pad = w.shape[1]
    return pl.pallas_call(
        _xw_kernel,
        out_shape=jax.ShapeDtypeStruct((n_pad, h_pad), jnp.bfloat16),
        grid=(n_pad // tm,),
        in_specs=[pl.BlockSpec((tm, f_dim), lambda i: (i, 0)),
                  pl.BlockSpec((f_dim, h_pad), lambda i: (0, 0))],
        out_specs=pl.BlockSpec((tm, h_pad), lambda i: (i, 0)),
        compiler_params=pltpu.CompilerParams(
            dimension_semantics=("parallel",),
            vmem_limit_bytes=_VMEM_LIMIT),
    )(x, w)


def _agg_kernel(a_ref, xw_ref, b_ref, o_ref, acc_ref, *, apply_relu):
    # out = A_hat @ XW + b (+ReLU), tiled over rows (i) and contraction (k).
    k = pl.program_id(1)

    @pl.when(k == 0)
    def _():
        acc_ref[...] = jnp.zeros_like(acc_ref)

    acc_ref[...] += jnp.dot(a_ref[...], xw_ref[...],
                            preferred_element_type=jnp.float32)

    @pl.when(k == pl.num_programs(1) - 1)
    def _():
        out = acc_ref[...] + b_ref[...]
        if apply_relu:
            out = jnp.maximum(out, 0.0)
        o_ref[...] = out.astype(o_ref.dtype)


def gcn_aggregate(a_hat_bf16, xw_bf16, b, *, tm, tk, apply_relu):
    n_pad = a_hat_bf16.shape[0]
    h_pad = xw_bf16.shape[1]
    kern = functools.partial(_agg_kernel, apply_relu=apply_relu)
    return pl.pallas_call(
        kern,
        out_shape=jax.ShapeDtypeStruct((n_pad, h_pad), jnp.float32),
        grid=(n_pad // tm, n_pad // tk),
        in_specs=[pl.BlockSpec((tm, tk), lambda i, k: (i, k)),
                  pl.BlockSpec((tk, h_pad), lambda i, k: (k, 0)),
                  pl.BlockSpec((1, h_pad), lambda i, k: (0, 0))],
        out_specs=pl.BlockSpec((tm, h_pad), lambda i, k: (i, 0)),
        scratch_shapes=[pltpu.VMEM((tm, h_pad), jnp.float32)],
        compiler_params=pltpu.CompilerParams(
            dimension_semantics=("parallel", "arbitrary"),
            vmem_limit_bytes=_VMEM_LIMIT),
    )(a_hat_bf16, xw_bf16, b)


def _pool_linear_kernel(p_ref, h_ref, lw_ref, lb_ref, o_ref, acc_ref):
    # pooled = pool @ h (streamed over node tiles); out = pooled @ lin_w + lin_b.
    k = pl.program_id(0)

    @pl.when(k == 0)
    def _():
        acc_ref[...] = jnp.zeros_like(acc_ref)

    acc_ref[...] += jnp.dot(p_ref[...], h_ref[...],
                            preferred_element_type=jnp.float32)

    @pl.when(k == pl.num_programs(0) - 1)
    def _():
        o_ref[...] = (jnp.dot(acc_ref[...], lw_ref[...],
                              preferred_element_type=jnp.float32)
                      + lb_ref[...]).astype(o_ref.dtype)


def pool_linear(pool_mat, h, lin_w, lin_b, *, tk):
    b_pad, n_pad = pool_mat.shape
    h_pad = h.shape[1]
    o_pad = lin_w.shape[1]
    return pl.pallas_call(
        _pool_linear_kernel,
        out_shape=jax.ShapeDtypeStruct((b_pad, o_pad), jnp.float32),
        grid=(n_pad // tk,),
        in_specs=[pl.BlockSpec((b_pad, tk), lambda k: (0, k)),
                  pl.BlockSpec((tk, h_pad), lambda k: (k, 0)),
                  pl.BlockSpec((h_pad, o_pad), lambda k: (0, 0)),
                  pl.BlockSpec((1, o_pad), lambda k: (0, 0))],
        out_specs=pl.BlockSpec((b_pad, o_pad), lambda k: (0, 0)),
        scratch_shapes=[pltpu.VMEM((b_pad, h_pad), jnp.float32)],
        compiler_params=pltpu.CompilerParams(
            dimension_semantics=("arbitrary",),
            vmem_limit_bytes=_VMEM_LIMIT),
    )(pool_mat, h, lin_w, lin_b)


# ---------------------- fused whole-forward (small N) -----------------------

def _fused_forward_kernel(*refs, num_layers):
    # refs = [a, x, w0, b0, ..., w_{L-1}, b_{L-1}, pool, lin_w, lin_b, out]
    a_ref, x_ref = refs[0], refs[1]
    wb_refs = refs[2:2 + 2 * num_layers]
    pool_ref, lw_ref, lb_ref, o_ref = refs[-4], refs[-3], refs[-2], refs[-1]

    a = a_ref[...]                        # bf16 (N_pad, N_pad), resident
    h = x_ref[...]                        # f32  (N_pad, F_pad)
    for li in range(num_layers):
        w = wb_refs[2 * li][...]
        b = wb_refs[2 * li + 1][...]
        xw = jnp.dot(h, w, preferred_element_type=jnp.float32).astype(jnp.bfloat16)
        h = jnp.dot(a, xw, preferred_element_type=jnp.float32) + b
        if li < num_layers - 1:
            h = jnp.maximum(h, 0.0)
    pooled = jnp.dot(pool_ref[...], h, preferred_element_type=jnp.float32)
    o_ref[...] = (jnp.dot(pooled, lw_ref[...], preferred_element_type=jnp.float32)
                  + lb_ref[...]).astype(o_ref.dtype)


def _fused_forward(a_bf16, x, w_list, b_list, pool_mat, lin_w, lin_b):
    num_layers = len(w_list)
    b_pad = pool_mat.shape[0]
    o_pad = lin_w.shape[1]
    inputs = [a_bf16, x]
    for w, b in zip(w_list, b_list):
        inputs += [w, b]
    inputs += [pool_mat, lin_w, lin_b]
    in_specs = [pl.BlockSpec(arr.shape, lambda i: (0, 0)) for arr in inputs]
    kern = functools.partial(_fused_forward_kernel, num_layers=num_layers)
    return pl.pallas_call(
        kern,
        out_shape=jax.ShapeDtypeStruct((b_pad, o_pad), jnp.float32),
        grid=(1,),
        in_specs=in_specs,
        out_specs=pl.BlockSpec((b_pad, o_pad), lambda i: (0, 0)),
        compiler_params=pltpu.CompilerParams(
            dimension_semantics=("arbitrary",),
            vmem_limit_bytes=_VMEM_LIMIT),
    )(*inputs)


# ------------------------------ GCN wrapper ---------------------------------

def gcn_forward(x, a_hat, pool_mat, params, *, force_tiled=False):
    """Full GCN forward (eval mode; dropout is identity). Sum pooling."""
    conv_ws, conv_bs, lin_w, lin_b = params
    num_layers = len(conv_ws)
    n, in_ch = x.shape
    b_graphs = pool_mat.shape[0]
    hidden = conv_ws[0].shape[1]
    out_ch = lin_w.shape[1]

    # Tile / padding sizes: lane-dense feature dims, tiled node dim.
    tile = 128 if n <= 128 else 256
    n_pad = _round_up(n, tile)
    f_pad = _round_up(in_ch, 128)
    h_pad = _round_up(hidden, 128)
    o_pad = _round_up(out_ch, 128)
    b_pad = _round_up(b_graphs, 8)

    # Zero-pad everything (padded rows/cols of A_hat / pool are zero, so any
    # garbage in padded node rows never contaminates real outputs).
    x_p = _pad2(x.astype(jnp.float32), n_pad, f_pad)
    a_p = _pad2(a_hat.astype(jnp.float32), n_pad, n_pad).astype(jnp.bfloat16)
    pool_p = _pad2(pool_mat.astype(jnp.float32), b_pad, n_pad)
    w_p, b_p = [], []
    for li in range(num_layers):
        fin = in_ch if li == 0 else hidden
        fin_pad = f_pad if li == 0 else h_pad
        w_p.append(_pad2(conv_ws[li].astype(jnp.float32), fin_pad, h_pad))
        b_p.append(_pad2(conv_bs[li].astype(jnp.float32), 1, h_pad))
        del fin
    lw_p = _pad2(lin_w.astype(jnp.float32), h_pad, o_pad)
    lb_p = _pad2(lin_b.astype(jnp.float32), 1, o_pad)

    if (not force_tiled) and n_pad <= _FUSED_MAX_N:
        out_p = _fused_forward(a_p, x_p, w_p, b_p, pool_p, lw_p, lb_p)
    else:
        h = x_p
        for li in range(num_layers):
            xw = xw_matmul(h, w_p[li], tm=tile)
            h = gcn_aggregate(a_p, xw, b_p[li], tm=tile, tk=tile,
                              apply_relu=(li < num_layers - 1))
        out_p = pool_linear(pool_p, h, lw_p, lb_p, tk=tile)

    return out_p[:b_graphs, :out_ch]


def build_normalized_adjacency(adj):
    """A_hat = D^{-1/2} (A + I) D^{-1/2}  (plain-JAX glue)."""
    n = adj.shape[0]
    a = adj + jnp.eye(n, dtype=jnp.float32)
    deg = jnp.sum(a, axis=1)
    d_inv_sqrt = jnp.where(deg > 0, 1.0 / jnp.sqrt(deg), 0.0)
    return a * d_inv_sqrt[:, None] * d_inv_sqrt[None, :]


def init_params(key, num_layers, in_ch, hidden, out_ch):
    keys = jax.random.split(key, 2 * num_layers + 2)
    conv_ws, conv_bs = [], []
    dims_in = [in_ch] + [hidden] * (num_layers - 1)
    for li in range(num_layers):
        fan_in, fan_out = dims_in[li], hidden
        scale = jnp.sqrt(6.0 / (fan_in + fan_out))  # glorot
        w = jax.random.uniform(keys[2 * li], (fan_in, fan_out), jnp.float32,
                               -scale, scale)
        b = jnp.zeros((1, fan_out), jnp.float32)
        conv_ws.append(w)
        conv_bs.append(b)
    scale = jnp.sqrt(6.0 / (hidden + out_ch))
    lin_w = jax.random.uniform(keys[-2], (hidden, out_ch), jnp.float32,
                               -scale, scale)
    lin_b = jax.random.uniform(keys[-1], (1, out_ch), jnp.float32,
                               -scale, scale)
    return conv_ws, conv_bs, lin_w, lin_b


def reference_forward(x, a_hat, pool_mat, params):
    """Pure-JAX reference mirroring the kernel dtype policy (bf16 A_hat / XW)."""
    conv_ws, conv_bs, lin_w, lin_b = params
    a_bf16 = a_hat.astype(jnp.bfloat16)
    h = x
    num_layers = len(conv_ws)
    for li in range(num_layers):
        xw = jnp.dot(h, conv_ws[li],
                     preferred_element_type=jnp.float32).astype(jnp.bfloat16)
        h = jnp.dot(a_bf16, xw, preferred_element_type=jnp.float32) + conv_bs[li]
        if li < num_layers - 1:
            h = jnp.maximum(h, 0.0)
    pooled = jnp.dot(pool_mat, h, preferred_element_type=jnp.float32)
    return jnp.dot(pooled, lin_w, preferred_element_type=jnp.float32) + lin_b


# --------------------------------- demo -------------------------------------

if __name__ == "__main__":
    # Small synthetic batch of 2 graphs: 12 + 12 = 24 nodes, 16 input features,
    # 3 GCN layers, hidden=32, out_channels=4, sum pooling, dropout (eval -> id).
    NUM_LAYERS, IN_CH, HIDDEN, OUT_CH = 3, 16, 32, 4
    N1, N2 = 12, 12
    N, B = N1 + N2, 2

    root = jax.random.PRNGKey(0)
    k_x, k_a1, k_a2, k_params = jax.random.split(root, 4)

    x = jax.random.normal(k_x, (N, IN_CH), jnp.float32)

    def rand_adj(key, n):
        a = (jax.random.uniform(key, (n, n)) < 0.3).astype(jnp.float32)
        a = jnp.maximum(a, a.T)
        return a * (1.0 - jnp.eye(n, dtype=jnp.float32))

    adj = jnp.zeros((N, N), jnp.float32)
    adj = adj.at[:N1, :N1].set(rand_adj(k_a1, N1))
    adj = adj.at[N1:, N1:].set(rand_adj(k_a2, N2))
    a_hat = build_normalized_adjacency(adj)

    batch_ids = jnp.concatenate([jnp.zeros((N1,), jnp.int32),
                                 jnp.ones((N2,), jnp.int32)])
    pool_mat = (batch_ids[None, :] == jnp.arange(B, dtype=jnp.int32)[:, None]
                ).astype(jnp.float32)

    params = init_params(k_params, NUM_LAYERS, IN_CH, HIDDEN, OUT_CH)

    # TODO(synk): dropout with training=True (stochastic masking) and 'max'
    # pooling are not modeled; this is eval mode with sum pooling ('mean'
    # pooling is just a row-normalized pool_mat).
    out_fused = jax.block_until_ready(gcn_forward(x, a_hat, pool_mat, params))
    out_tiled = jax.block_until_ready(
        gcn_forward(x, a_hat, pool_mat, params, force_tiled=True))
    ref = jax.block_until_ready(reference_forward(x, a_hat, pool_mat, params))

    assert out_fused.shape == (B, OUT_CH), out_fused.shape
    assert out_tiled.shape == (B, OUT_CH), out_tiled.shape
    assert bool(jnp.allclose(out_fused, ref, rtol=2e-2, atol=2e-2))
    assert bool(jnp.allclose(out_tiled, ref, rtol=2e-2, atol=2e-2))
    assert bool(jnp.allclose(out_tiled, out_fused, rtol=2e-2, atol=2e-2))
    print("KERNEL_OK")
</pallas_src>

<mosaic_0001>
module attributes {stable_mosaic.version = 11 : i64} {
  func.func @_fused_forward_kernel(%arg0: i32, %arg1: memref<128x128xbf16, #tpu.memory_space<vmem>>, %arg2: memref<128x128xf32, #tpu.memory_space<vmem>>, %arg3: memref<128x128xf32, #tpu.memory_space<vmem>>, %arg4: memref<1x128xf32, #tpu.memory_space<vmem>>, %arg5: memref<128x128xf32, #tpu.memory_space<vmem>>, %arg6: memref<1x128xf32, #tpu.memory_space<vmem>>, %arg7: memref<128x128xf32, #tpu.memory_space<vmem>>, %arg8: memref<1x128xf32, #tpu.memory_space<vmem>>, %arg9: memref<8x128xf32, #tpu.memory_space<vmem>>, %arg10: memref<128x128xf32, #tpu.memory_space<vmem>>, %arg11: memref<1x128xf32, #tpu.memory_space<vmem>>, %arg12: memref<8x128xf32, #tpu.memory_space<vmem>>) attributes {dimension_semantics = [#tpu.dimension_semantics<arbitrary>], iteration_bounds = array<i64: 1>, scalar_prefetch = 0 : i64, scratch_operands = 0 : i64, tpu.core_type = #tpu.core_type<tc>, window_params = [{pipeline_mode = #tpu.pipeline_mode<synchronous>, transform_indices = @transform_0, window_bounds = array<i64: 128, 128>}, {pipeline_mode = #tpu.pipeline_mode<synchronous>, transform_indices = @transform_1, window_bounds = array<i64: 128, 128>}, {pipeline_mode = #tpu.pipeline_mode<synchronous>, transform_indices = @transform_2, window_bounds = array<i64: 128, 128>}, {pipeline_mode = #tpu.pipeline_mode<synchronous>, transform_indices = @transform_3, window_bounds = array<i64: 1, 128>}, {pipeline_mode = #tpu.pipeline_mode<synchronous>, transform_indices = @transform_4, window_bounds = array<i64: 128, 128>}, {pipeline_mode = #tpu.pipeline_mode<synchronous>, transform_indices = @transform_5, window_bounds = array<i64: 1, 128>}, {pipeline_mode = #tpu.pipeline_mode<synchronous>, transform_indices = @transform_6, window_bounds = array<i64: 128, 128>}, {pipeline_mode = #tpu.pipeline_mode<synchronous>, transform_indices = @transform_7, window_bounds = array<i64: 1, 128>}, {pipeline_mode = #tpu.pipeline_mode<synchronous>, transform_indices = @transform_8, window_bounds = array<i64: 8, 128>}, {pipeline_mode = #tpu.pipeline_mode<synchronous>, transform_indices = @transform_9, window_bounds = array<i64: 128, 128>}, {pipeline_mode = #tpu.pipeline_mode<synchronous>, transform_indices = @transform_10, window_bounds = array<i64: 1, 128>}, {pipeline_mode = #tpu.pipeline_mode<synchronous>, transform_indices = @transform_11, window_bounds = array<i64: 8, 128>}]} {
    %c0 = arith.constant 0 : index
    %c0_0 = arith.constant 0 : index
    %0 = vector.load %arg1[%c0, %c0_0] : memref<128x128xbf16, #tpu.memory_space<vmem>>, vector<128x128xbf16>
    %c0_1 = arith.constant 0 : index
    %c0_2 = arith.constant 0 : index
    %1 = vector.load %arg2[%c0_1, %c0_2] : memref<128x128xf32, #tpu.memory_space<vmem>>, vector<128x128xf32>
    %c0_3 = arith.constant 0 : index
    %c0_4 = arith.constant 0 : index
    %2 = vector.load %arg3[%c0_3, %c0_4] : memref<128x128xf32, #tpu.memory_space<vmem>>, vector<128x128xf32>
    %c0_5 = arith.constant 0 : index
    %c0_6 = arith.constant 0 : index
    %3 = vector.load %arg4[%c0_5, %c0_6] : memref<1x128xf32, #tpu.memory_space<vmem>>, vector<1x128xf32>
    %cst = arith.constant dense<0.000000e+00> : vector<128x128xf32>
    %4 = tpu.matmul %1, %2, %cst {dimension_numbers = #tpu.dot_dimension_numbers<[1], [0], [0], [1], [0, 0, 1, 1], [], []>} : vector<128x128xf32>, vector<128x128xf32>, vector<128x128xf32> -> vector<128x128xf32>
    %5 = arith.truncf %4 : vector<128x128xf32> to vector<128x128xbf16>
    %cst_7 = arith.constant dense<0.000000e+00> : vector<128x128xf32>
    %6 = tpu.matmul %0, %5, %cst_7 {dimension_numbers = #tpu.dot_dimension_numbers<[1], [0], [0], [1], [0, 0, 1, 1], [], []>} : vector<128x128xbf16>, vector<128x128xbf16>, vector<128x128xf32> -> vector<128x128xf32>
    %7 = vector.broadcast %3 : vector<1x128xf32> to vector<128x128xf32>
    %8 = arith.addf %6, %7 : vector<128x128xf32>
    %cst_8 = arith.constant 0.000000e+00 : f32
    %9 = vector.broadcast %cst_8 : f32 to vector<128x128xf32>
    %10 = arith.maximumf %8, %9 : vector<128x128xf32>
    %c0_9 = arith.constant 0 : index
    %c0_10 = arith.constant 0 : index
    %11 = vector.load %arg5[%c0_9, %c0_10] : memref<128x128xf32, #tpu.memory_space<vmem>>, vector<128x128xf32>
    %c0_11 = arith.constant 0 : index
    %c0_12 = arith.constant 0 : index
    %12 = vector.load %arg6[%c0_11, %c0_12] : memref<1x128xf32, #tpu.memory_space<vmem>>, vector<1x128xf32>
    %cst_13 = arith.constant dense<0.000000e+00> : vector<128x128xf32>
    %13 = tpu.matmul %10, %11, %cst_13 {dimension_numbers = #tpu.dot_dimension_numbers<[1], [0], [0], [1], [0, 0, 1, 1], [], []>} : vector<128x128xf32>, vector<128x128xf32>, vector<128x128xf32> -> vector<128x128xf32>
    %14 = arith.truncf %13 : vector<128x128xf32> to vector<128x128xbf16>
    %cst_14 = arith.constant dense<0.000000e+00> : vector<128x128xf32>
    %15 = tpu.matmul %0, %14, %cst_14 {dimension_numbers = #tpu.dot_dimension_numbers<[1], [0], [0], [1], [0, 0, 1, 1], [], []>} : vector<128x128xbf16>, vector<128x128xbf16>, vector<128x128xf32> -> vector<128x128xf32>
    %16 = vector.broadcast %12 : vector<1x128xf32> to vector<128x128xf32>
    %17 = arith.addf %15, %16 : vector<128x128xf32>
    %cst_15 = arith.constant 0.000000e+00 : f32
    %18 = vector.broadcast %cst_15 : f32 to vector<128x128xf32>
    %19 = arith.maximumf %17, %18 : vector<128x128xf32>
    %c0_16 = arith.constant 0 : index
    %c0_17 = arith.constant 0 : index
    %20 = vector.load %arg7[%c0_16, %c0_17] : memref<128x128xf32, #tpu.memory_space<vmem>>, vector<128x128xf32>
    %c0_18 = arith.constant 0 : index
    %c0_19 = arith.constant 0 : index
    %21 = vector.load %arg8[%c0_18, %c0_19] : memref<1x128xf32, #tpu.memory_space<vmem>>, vector<1x128xf32>
    %cst_20 = arith.constant dense<0.000000e+00> : vector<128x128xf32>
    %22 = tpu.matmul %19, %20, %cst_20 {dimension_numbers = #tpu.dot_dimension_numbers<[1], [0], [0], [1], [0, 0, 1, 1], [], []>} : vector<128x128xf32>, vector<128x128xf32>, vector<128x128xf32> -> vector<128x128xf32>
    %23 = arith.truncf %22 : vector<128x128xf32> to vector<128x128xbf16>
    %cst_21 = arith.constant dense<0.000000e+00> : vector<128x128xf32>
    %24 = tpu.matmul %0, %23, %cst_21 {dimension_numbers = #tpu.dot_dimension_numbers<[1], [0], [0], [1], [0, 0, 1, 1], [], []>} : vector<128x128xbf16>, vector<128x128xbf16>, vector<128x128xf32> -> vector<128x128xf32>
    %25 = vector.broadcast %21 : vector<1x128xf32> to vector<128x128xf32>
    %26 = arith.addf %24, %25 : vector<128x128xf32>
    %c0_22 = arith.constant 0 : index
    %c0_23 = arith.constant 0 : index
    %27 = vector.load %arg9[%c0_22, %c0_23] : memref<8x128xf32, #tpu.memory_space<vmem>>, vector<8x128xf32>
    %cst_24 = arith.constant dense<0.000000e+00> : vector<8x128xf32>
    %28 = tpu.matmul %27, %26, %cst_24 {dimension_numbers = #tpu.dot_dimension_numbers<[1], [0], [0], [1], [0, 0, 1, 1], [], []>} : vector<8x128xf32>, vector<128x128xf32>, vector<8x128xf32> -> vector<8x128xf32>
    %c0_25 = arith.constant 0 : index
    %c0_26 = arith.constant 0 : index
    %29 = vector.load %arg10[%c0_25, %c0_26] : memref<128x128xf32, #tpu.memory_space<vmem>>, vector<128x128xf32>
    %cst_27 = arith.constant dense<0.000000e+00> : vector<8x128xf32>
    %30 = tpu.matmul %28, %29, %cst_27 {dimension_numbers = #tpu.dot_dimension_numbers<[1], [0], [0], [1], [0, 0, 1, 1], [], []>} : vector<8x128xf32>, vector<128x128xf32>, vector<8x128xf32> -> vector<8x128xf32>
    %c0_28 = arith.constant 0 : index
    %c0_29 = arith.constant 0 : index
    %31 = vector.load %arg11[%c0_28, %c0_29] : memref<1x128xf32, #tpu.memory_space<vmem>>, vector<1x128xf32>
    %32 = vector.broadcast %31 : vector<1x128xf32> to vector<8x128xf32>
    %33 = arith.addf %30, %32 : vector<8x128xf32>
    %c0_30 = arith.constant 0 : index
    %c0_31 = arith.constant 0 : index
    %34 = vector.load %arg12[%c0_30, %c0_31] : memref<8x128xf32, #tpu.memory_space<vmem>>, vector<8x128xf32>
    tpu.vector_store %arg12[%c0_30, %c0_31], %33 {strides = array<i32>} : memref<8x128xf32, #tpu.memory_space<vmem>>, vector<8x128xf32>,
    return
  }
  func.func @transform_0(%arg0: i32) -> (i32, i32) {
    %c0_i32 = arith.constant 0 : i32
    %c0_i32_0 = arith.constant 0 : i32
    %c0_i32_1 = arith.constant 0 : i32
    return %c0_i32, %c0_i32_0 : i32, i32
  }
  func.func @transform_1(%arg0: i32) -> (i32, i32) {
    %c0_i32 = arith.constant 0 : i32
    %c0_i32_0 = arith.constant 0 : i32
    %c0_i32_1 = arith.constant 0 : i32
    return %c0_i32, %c0_i32_0 : i32, i32
  }
  func.func @transform_2(%arg0: i32) -> (i32, i32) {
    %c0_i32 = arith.constant 0 : i32
    %c0_i32_0 = arith.constant 0 : i32
    %c0_i32_1 = arith.constant 0 : i32
    return %c0_i32, %c0_i32_0 : i32, i32
  }
  func.func @transform_3(%arg0: i32) -> (i32, i32) {
    %c0_i32 = arith.constant 0 : i32
    %c0_i32_0 = arith.constant 0 : i32
    %c0_i32_1 = arith.constant 0 : i32
    return %c0_i32, %c0_i32_0 : i32, i32
  }
  func.func @transform_4(%arg0: i32) -> (i32, i32) {
    %c0_i32 = arith.constant 0 : i32
    %c0_i32_0 = arith.constant 0 : i32
    %c0_i32_1 = arith.constant 0 : i32
    return %c0_i32, %c0_i32_0 : i32, i32
  }
  func.func @transform_5(%arg0: i32) -> (i32, i32) {
    %c0_i32 = arith.constant 0 : i32
    %c0_i32_0 = arith.constant 0 : i32
    %c0_i32_1 = arith.constant 0 : i32
    return %c0_i32, %c0_i32_0 : i32, i32
  }
  func.func @transform_6(%arg0: i32) -> (i32, i32) {
    %c0_i32 = arith.constant 0 : i32
    %c0_i32_0 = arith.constant 0 : i32
    %c0_i32_1 = arith.constant 0 : i32
    return %c0_i32, %c0_i32_0 : i32, i32
  }
  func.func @transform_7(%arg0: i32) -> (i32, i32) {
    %c0_i32 = arith.constant 0 : i32
    %c0_i32_0 = arith.constant 0 : i32
    %c0_i32_1 = arith.constant 0 : i32
    return %c0_i32, %c0_i32_0 : i32, i32
  }
  func.func @transform_8(%arg0: i32) -> (i32, i32) {
    %c0_i32 = arith.constant 0 : i32
    %c0_i32_0 = arith.constant 0 : i32
    %c0_i32_1 = arith.constant 0 : i32
    return %c0_i32, %c0_i32_0 : i32, i32
  }
  func.func @transform_9(%arg0: i32) -> (i32, i32) {
    %c0_i32 = arith.constant 0 : i32
    %c0_i32_0 = arith.constant 0 : i32
    %c0_i32_1 = arith.constant 0 : i32
    return %c0_i32, %c0_i32_0 : i32, i32
  }
  func.func @transform_10(%arg0: i32) -> (i32, i32) {
    %c0_i32 = arith.constant 0 : i32
    %c0_i32_0 = arith.constant 0 : i32
    %c0_i32_1 = arith.constant 0 : i32
    return %c0_i32, %c0_i32_0 : i32, i32
  }
  func.func @transform_11(%arg0: i32) -> (i32, i32) {
    %c0_i32 = arith.constant 0 : i32
    %c0_i32_0 = arith.constant 0 : i32
    %c0_i32_1 = arith.constant 0 : i32
    return %c0_i32, %c0_i32_0 : i32, i32
  }
}

</mosaic_0001>

<bundles_post_ra>
// kernel: tpu_custom_call.1
= control target key start
LH: loop header
LB: loop body
LE: loop exit
PB: predicated region body
PF: predicated region fallthrough
CT: control target
= control target key end

     0   :  { %16 = vsyncpa [#allocation3], 0  ;;  %s2129_s0 = inlined_call_operand.hbm [shape: bf16[128,128], index: 0, kind: input, shape index: {}]   ;;  %s2130_s1 = inlined_call_operand.hbm [shape: f32[128,128], index: 1, kind: input, shape index: {}]   ;;  %s2131_s2 = inlined_call_operand.hbm [shape: f32[128,128], index: 2, kind: input, shape index: {}]   ;;  %s2132_s3 = inlined_call_operand.vmem [shape: f32[1,128], index: 3, kind: input, shape index: {}]   ;;  %s2133_s4 = inlined_call_operand.hbm [shape: f32[128,128], index: 4, kind: input, shape index: {}]   ;;  %s2134_s5 = inlined_call_operand.vmem [shape: f32[1,128], index: 5, kind: input, shape index: {}]   ;;  %s2135_s6 = inlined_call_operand.hbm [shape: f32[128,128], index: 6, kind: input, shape index: {}]   ;;  %s2136_s7 = inlined_call_operand.vmem [shape: f32[1,128], index: 7, kind: input, shape index: {}]   ;;  %s2137_s8 = inlined_call_operand.vmem [shape: f32[8,128], index: 8, kind: input, shape index: {}]   ;;  %s2138_s9 = inlined_call_operand.hbm [shape: f32[128,128], index: 9, kind: input, shape index: {}]   ;;  %s2139_s10 = inlined_call_operand.vmem [shape: f32[1,128], index: 10, kind: input, shape index: {}]   ;;  %s2140_s11 = inlined_call_operand.hbm [shape: f32[8,128], index: 11, kind: output, shape index: {}]  }
   0x1   :  { %17 = vsyncpa [#allocation6], 0 }
   0x2   :  { %18 = vsyncpa [#allocation9], 0 }
   0x3   :  { %19 = vsyncpa [#allocation12], 0 }
   0x4   :  { %20 = vsyncpa [#allocation4], 0  ;;  %s1931_s17 = smov [#allocation5]  }
   0x5   :  { %s38_s18 = sshll.u32 %s1931_s17, 4  ;;  %s39_s18 = int_to_ptr.vmem [resolvable:$true] %s38_s18 }
   0x6   :  { %s1789_s19 = scalar_lea.vmem %s39_s18, 2048  ;;  %p1794_p1 = scmp.lt.s32.totalorder %s39_s18, %s39_s18 }
   0x7   :  { %p1790_p0 = scmp.ne.s32.totalorder %s39_s18, %s1789_s19  ;;  %p1795_p2 = scmp.lt.s32.totalorder %s1789_s19, %s1789_s19 }
   0x9   :  { %p1796_p3 = por %p1795_p2, %p1794_p1 }
   0xb   :  { %p1797_p4 = pnand %p1796_p3, %p1790_p0 }
   0xd   :  { %1800 = shalt.err (!%p1797_p4)
}
   0xe   :  { %s1932_s20 = smov 128   ;;  %s1933_s21 = smov 8  }
   0xf   :  { %44 = dma.hbm_to_vmem [thread:$0]  %s2130_s1, 2048, %s39_s18, [#allocation6], %s1932_s20, %s1932_s20, %s1933_s21  }
  0x10   :  { %s1934_s24 = smov [#allocation8]   ;;  %s1935_s26 = smov [#allocation2]  }
  0x11   :  { %s64_s25 = sshll.u32 %s1934_s24, 4  ;;  %s26_s27 = sshll.u32 %s1935_s26, 4  ;;  %s65_s25 = int_to_ptr.vmem [resolvable:$true] %s64_s25  ;;  %s27_s27 = int_to_ptr.vmem [resolvable:$true] %s26_s27 }
  0x12   :  { %s1809_s28 = scalar_lea.vmem %s65_s25, 2048  ;;  %p1814_p6 = scmp.lt.s32.totalorder %s65_s25, %s65_s25 }
  0x13   :  { %p1810_p5 = scmp.ne.s32.totalorder %s65_s25, %s1809_s28  ;;  %p1815_p7 = scmp.lt.s32.totalorder %s1809_s28, %s1809_s28 }
  0x15   :  { %p1816_p8 = por %p1815_p7, %p1814_p6 }
  0x17   :  { %p1817_p9 = pnand %p1816_p8, %p1810_p5 }
  0x19   :  { %1820 = shalt.err (!%p1817_p9)
}
  0x1a   :  { %70 = dma.hbm_to_vmem [thread:$0]  %s2133_s4, 2048, %s65_s25, [#allocation9], %s1932_s20, %s1932_s20, %s1933_s21  }
  0x1b   :  { %s1829_s1 = scalar_lea.vmem %s27_s27, 1024  ;;  %p1834_p11 = scmp.lt.s32.totalorder %s27_s27, %s27_s27 }
  0x1c   :  { %p1830_p10 = scmp.ne.s32.totalorder %s27_s27, %s1829_s1  ;;  %p1835_p12 = scmp.lt.s32.totalorder %s1829_s1, %s1829_s1 }
  0x1e   :  { %p1836_p13 = por %p1835_p12, %p1834_p11 }
  0x20   :  { %p1837_p0 = pnand %p1836_p13, %p1830_p10 }
  0x22   :  { %1840 = shalt.err (!%p1837_p0)
}
  0x23   :  { %s1936_s12 = smov 64   ;;  %s1937_s13 = smov 4  }
  0x24   :  { %32 = dma.hbm_to_vmem [thread:$0]  %s2129_s0, 1024, %s27_s27, [#allocation3], %s1936_s12, %s1936_s12, %s1937_s13  }
  0x25   :  { %s1938_s16 = smov [#allocation7]   ;;  %s1939_s18 = smov [#allocation10]  }
  0x26   :  { %s50_s17 = sshll.u32 %s1938_s16, 4  ;;  %s78_s19 = sshll.u32 %s1939_s18, 4  ;;  %s51_s17 = int_to_ptr.vmem [resolvable:$true] %s50_s17  ;;  %s79_s19 = int_to_ptr.vmem [resolvable:$true] %s78_s19 }
  0x27   :  { %s1849_s4 = scalar_lea.vmem %s51_s17, 2048  ;;  %p1854_p2 = scmp.lt.s32.totalorder %s51_s17, %s51_s17 }
  0x28   :  { %p1850_p1 = scmp.ne.s32.totalorder %s51_s17, %s1849_s4  ;;  %p1855_p3 = scmp.lt.s32.totalorder %s1849_s4, %s1849_s4 }
  0x2a   :  { %p1856_p4 = por %p1855_p3, %p1854_p2 }
  0x2c   :  { %p1857_p5 = pnand %p1856_p4, %p1850_p1 }
  0x2e   :  { %1860 = shalt.err (!%p1857_p5)
}
  0x2f   :  { %56 = dma.hbm_to_vmem [thread:$0]  %s2131_s2, 2048, %s51_s17, [#allocation6], %s1932_s20, %s1932_s20, %s1933_s21  }
  0x30   :  { %s1869_s0 = scalar_lea.vmem %s79_s19, 2048  ;;  %p1874_p7 = scmp.lt.s32.totalorder %s79_s19, %s79_s19 }
  0x31   :  { %p1870_p6 = scmp.ne.s32.totalorder %s79_s19, %s1869_s0  ;;  %p1875_p8 = scmp.lt.s32.totalorder %s1869_s0, %s1869_s0 }
  0x33   :  { %p1876_p9 = por %p1875_p8, %p1874_p7 }
  0x35   :  { %p1877_p10 = pnand %p1876_p9, %p1870_p6 }
  0x37   :  { %1880 = shalt.err (!%p1877_p10)
}
  0x38   :  { %84 = dma.hbm_to_vmem [thread:$0]  %s2135_s6, 2048, %s79_s19, [#allocation9], %s1932_s20, %s1932_s20, %s1933_s21  }
  0x39   :  { %s1940_s26 = smov [#allocation11]  }
  0x3a   :  { %s94_s27 = sshll.u32 %s1940_s26, 4  ;;  %s95_s27 = int_to_ptr.vmem [resolvable:$true] %s94_s27 }
  0x3b   :  { %s1889_s28 = scalar_lea.vmem %s95_s27, 2048  ;;  %p1894_p12 = scmp.lt.s32.totalorder %s95_s27, %s95_s27 }
  0x3c   :  { %p1890_p11 = scmp.ne.s32.totalorder %s95_s27, %s1889_s28  ;;  %p1895_p13 = scmp.lt.s32.totalorder %s1889_s28, %s1889_s28 }
  0x3e   :  { %p1896_p0 = por %p1895_p13, %p1894_p12 }
  0x40   :  { %p1897_p1 = pnand %p1896_p0, %p1890_p11 }
  0x42   :  { %1900 = shalt.err (!%p1897_p1)
}
  0x43   :  { %100 = dma.hbm_to_vmem [thread:$0]  %s2138_s9, 2048, %s95_s27, [#allocation12], %s1932_s20, %s1932_s20, %s1933_s21  }
  0x44   :  { %1921 = dma.done.wait [#allocation3], 1024  }
  0x45   :  { %1922 = vsyncadd [#allocation3], 4294966272 }
  0x46   :  { %1923 = dma.done.wait [#allocation6], 4096  }
  0x47   :  { %1924 = vsyncadd [#allocation6], 4294963200 }
  0x48   :  { %1925 = dma.done.wait [#allocation9], 4096  }
  0x49   :  { %1926 = vsyncadd [#allocation9], 4294963200 }
  0x4a   :  { %1927 = dma.done.wait [#allocation12], 2048  }
  0x4b   :  { %1928 = vsyncadd [#allocation12], 4294965248  ;;  %v169_v0 = vld [vmem:[#allocation7 + $0x78] sm:$0xff]  ;;  %v168_v1 = vld [vmem:[#allocation7 + $0x70] sm:$0xff]  ;;  %vm1942_vm0 = vmmov 0   ;;  %s1943_s13 = smov [#allocation13]  }
  0x4c   :  { %1426 = vmatprep.subr.mxu0 %v169_v0  ;;  %v167_v2 = vld [vmem:[#allocation7 + $0x68] sm:$0xff]  ;;  %v166_v3 = vld [vmem:[#allocation7 + $0x60] sm:$0xff]  ;;  %v165_v5 = vld [vmem:[#allocation7 + $0x58] sm:$0xff]  ;;  %s1224_s14 = sshll.u32 %s1943_s13, 4  ;;  %s1225_s14 = int_to_ptr.vmem [resolvable:$true] %s1224_s14 }
  0x4d   :  { %1427 = vmatpush3.msra.mxu0 %v169_v0  ;;  %v138_v4 = vld [vmem:[#allocation5] sm:$0xff]  ;;  %v164_v6 = vld [vmem:[#allocation7 + $0x50] sm:$0xff]  ;;  %v163_v7 = vld [vmem:[#allocation7 + $0x48] sm:$0xff]  ;;  %p1906_p3 = scmp.lt.s32.totalorder %s1225_s14, %s1225_s14 }
  0x4e   :  { %1428 = vmatprep.subr.mxu0 %v168_v1  ;;  %1458 = vmatprep.mubr.f32.mxu0 %v138_v4  ;;  %v162_v8 = vld [vmem:[#allocation7 + $0x40] sm:$0xff]  ;;  %v161_v9 = vld [vmem:[#allocation7 + $0x38] sm:$0xff]  ;;  %v160_v10 = vld [vmem:[#allocation7 + $0x30] sm:$0xff] }
  0x4f   :  { %1429 = vmatpush3.msra.mxu0 %v168_v1  ;;  %v159_v11 = vld [vmem:[#allocation7 + $0x28] sm:$0xff]  ;;  %v158_v12 = vld [vmem:[#allocation7 + $0x20] sm:$0xff]  ;;  %v157_v13 = vld [vmem:[#allocation7 + $0x18] sm:$0xff] }
  0x50   :  { %1430 = vmatprep.subr.mxu0 %v167_v2  ;;  %v156_v14 = vld [vmem:[#allocation7 + $0x10] sm:$0xff]  ;;  %v155_v15 = vld [vmem:[#allocation7 + $0x8] sm:$0xff]  ;;  %v154_v16 = vld [vmem:[#allocation7] sm:$0xff] }
  0x51   :  { %1431 = vmatpush3.msra.mxu0 %v167_v2  ;;  %v139_v17 = vld [vmem:[#allocation5 + $0x8] sm:$0xff]  ;;  %v140_v18 = vld [vmem:[#allocation5 + $0x10] sm:$0xff]  ;;  %v141_v19 = vld [vmem:[#allocation5 + $0x18] sm:$0xff] }
  0x52   :  { %1432 = vmatprep.subr.mxu0 %v166_v3  ;;  %v142_v20 = vld [vmem:[#allocation5 + $0x20] sm:$0xff]  ;;  %v143_v21 = vld [vmem:[#allocation5 + $0x28] sm:$0xff]  ;;  %v144_v22 = vld [vmem:[#allocation5 + $0x30] sm:$0xff] }
  0x53   :  { %1433 = vmatpush3.msra.mxu0 %v166_v3  ;;  %v145_v23 = vld [vmem:[#allocation5 + $0x38] sm:$0xff]  ;;  %v146_v24 = vld [vmem:[#allocation5 + $0x40] sm:$0xff]  ;;  %v147_v25 = vld [vmem:[#allocation5 + $0x48] sm:$0xff] }
  0x54   :  { %1434 = vmatprep.subr.mxu0 %v165_v5  ;;  %v148_v26 = vld [vmem:[#allocation5 + $0x50] sm:$0xff]  ;;  %v149_v27 = vld [vmem:[#allocation5 + $0x58] sm:$0xff]  ;;  %v150_v28 = vld [vmem:[#allocation5 + $0x60] sm:$0xff] }
  0x55   :  { %1435 = vmatpush3.msra.mxu0 %v165_v5  ;;  %v151_v29 = vld [vmem:[#allocation5 + $0x68] sm:$0xff]  ;;  %v152_v30 = vld [vmem:[#allocation5 + $0x70] sm:$0xff]  ;;  %v153_v31 = vld [vmem:[#allocation5 + $0x78] sm:$0xff] }
  0x56   :  { %1436 = vmatprep.subr.mxu0 %v164_v6  ;;  %v2037_v32 = vld [vmem:[#allocation2] sm:$0xff]   ;;  %v506_v33 = vld [vmem:[#allocation8 + $0x78] sm:$0xff]  ;;  %v505_v34 = vld [vmem:[#allocation8 + $0x70] sm:$0xff] }
  0x57   :  { %1437 = vmatpush3.msra.mxu0 %v164_v6  ;;  %1498 = vmatprep.mubr.bf16.mxu1 %v2037_v32  ;;  %v504_v35 = vld [vmem:[#allocation8 + $0x68] sm:$0xff]  ;;  %v503_v36 = vld [vmem:[#allocation8 + $0x60] sm:$0xff]  ;;  %v502_v37 = vld [vmem:[#allocation8 + $0x58] sm:$0xff] }
  0x58   :  { %1438 = vmatprep.subr.mxu0 %v163_v7  ;;  %v501_v38 = vld [vmem:[#allocation8 + $0x50] sm:$0xff]  ;;  %v500_v39 = vld [vmem:[#allocation8 + $0x48] sm:$0xff]  ;;  %v499_v40 = vld [vmem:[#allocation8 + $0x40] sm:$0xff] }
  0x59   :  { %1439 = vmatpush3.msra.mxu0 %v163_v7  ;;  %v498_v41 = vld [vmem:[#allocation8 + $0x38] sm:$0xff]  ;;  %v497_v42 = vld [vmem:[#allocation8 + $0x30] sm:$0xff]  ;;  %v496_v43 = vld [vmem:[#allocation8 + $0x28] sm:$0xff] }
  0x5a   :  { %1440 = vmatprep.subr.mxu0 %v162_v8  ;;  %v2040_v4 = vld [vmem:[#allocation2 + $0x8] sm:$0xff]   ;;  %v2042_v5 = vld [vmem:[#allocation2 + $0x10] sm:$0xff]   ;;  %v2046_v6 = vld [vmem:[#allocation2 + $0x18] sm:$0xff]  }
  0x5b   :  { %1441 = vmatpush3.msra.mxu0 %v162_v8  ;;  %v2048_v7 = vld [vmem:[#allocation2 + $0x20] sm:$0xff]   ;;  %v2052_v8 = vld [vmem:[#allocation2 + $0x28] sm:$0xff]  }
  0x5c   :  { %1442 = vmatprep.subr.mxu0 %v161_v9 }
  0x5d   :  { %1443 = vmatpush3.msra.mxu0 %v161_v9  ;;  %v2054_v9 = vld [vmem:[#allocation2 + $0x30] sm:$0xff]  }
  0x5e   :  { %1444 = vmatprep.subr.mxu0 %v160_v10 }
  0x5f   :  { %1445 = vmatpush3.msra.mxu0 %v160_v10  ;;  %v2058_v10 = vld [vmem:[#allocation2 + $0x38] sm:$0xff]  }
  0x60   :  { %1446 = vmatprep.subr.mxu0 %v159_v11 }
  0x61   :  { %1447 = vmatpush3.msra.mxu0 %v159_v11  ;;  %v495_v11 = vld [vmem:[#allocation8 + $0x20] sm:$0xff] }
  0x62   :  { %1448 = vmatprep.subr.mxu0 %v158_v12 }
  0x63   :  { %1449 = vmatpush3.msra.mxu0 %v158_v12  ;;  %v494_v12 = vld [vmem:[#allocation8 + $0x18] sm:$0xff] }
  0x64   :  { %1450 = vmatprep.subr.mxu0 %v157_v13 }
  0x65   :  { %1451 = vmatpush3.msra.mxu0 %v157_v13  ;;  %v493_v13 = vld [vmem:[#allocation8 + $0x10] sm:$0xff] }
  0x66   :  { %1452 = vmatprep.subr.mxu0 %v156_v14 }
  0x67   :  { %1453 = vmatpush3.msra.mxu0 %v156_v14  ;;  %v492_v14 = vld [vmem:[#allocation8 + $0x8] sm:$0xff] }
  0x68   :  { %1454 = vmatprep.subr.mxu0 %v155_v15 }
  0x69   :  { %1455 = vmatpush3.msra.mxu0 %v155_v15  ;;  %v491_v15 = vld [vmem:[#allocation8] sm:$0xff] }
  0x6a   :  { %1456 = vmatprep.subr.mxu0 %v154_v16 }
  0x6b   :  { %1457 = vmatpush3.msra.mxu0 %v154_v16 }
  0x6c   :  { %1459 = vmatmul.mubr.f32.vlgmr.msra.gmra.mxu0 %v139_v17  ;;  %1514 = vmatprep.subr.mxu0 %v506_v33  ;;  %v1236_v17 = vld [vmem:[%s2132_s3] ss:$0 sm:$0xff] }
  0x6d   :  { %1461 = vmatprep.mubr.f32.mxu0 %v140_v18  ;;  %1515 = vmatpush3.msra.mxu0 %v506_v33 }
  0x6e   :  { %1516 = vmatprep.subr.mxu0 %v505_v34 }
  0x6f   :  { %1517 = vmatpush3.msra.mxu0 %v505_v34 }
  0x70   :  { %1462 = vmatmul.mubr.f32.gmra.mxu0 %v141_v19  ;;  %1518 = vmatprep.subr.mxu0 %v504_v35 }
  0x71   :  { %1464 = vmatprep.mubr.f32.mxu0 %v142_v20  ;;  %1519 = vmatpush3.msra.mxu0 %v504_v35 }
  0x72   :  { %1520 = vmatprep.subr.mxu0 %v503_v36 }
  0x73   :  { %1521 = vmatpush3.msra.mxu0 %v503_v36 }
  0x74   :  { %1465 = vmatmul.mubr.f32.gmra.mxu0 %v143_v21  ;;  %1522 = vmatprep.subr.mxu0 %v502_v37 }
  0x75   :  { %1467 = vmatprep.mubr.f32.mxu0 %v144_v22  ;;  %1523 = vmatpush3.msra.mxu0 %v502_v37 }
  0x76   :  { %1524 = vmatprep.subr.mxu0 %v501_v38 }
  0x77   :  { %1525 = vmatpush3.msra.mxu0 %v501_v38 }
  0x78   :  { %1468 = vmatmul.mubr.f32.gmra.mxu0 %v145_v23  ;;  %1526 = vmatprep.subr.mxu0 %v500_v39 }
  0x79   :  { %1470 = vmatprep.mubr.f32.mxu0 %v146_v24  ;;  %1527 = vmatpush3.msra.mxu0 %v500_v39 }
  0x7a   :  { %1528 = vmatprep.subr.mxu0 %v499_v40 }
  0x7b   :  { %1529 = vmatpush3.msra.mxu0 %v499_v40 }
  0x7c   :  { %1471 = vmatmul.mubr.f32.gmra.mxu0 %v147_v25  ;;  %1530 = vmatprep.subr.mxu0 %v498_v41 }
  0x7d   :  { %1473 = vmatprep.mubr.f32.mxu0 %v148_v26  ;;  %1531 = vmatpush3.msra.mxu0 %v498_v41 }
  0x7e   :  { %1532 = vmatprep.subr.mxu0 %v497_v42 }
  0x7f   :  { %1533 = vmatpush3.msra.mxu0 %v497_v42 }
  0x80   :  { %1474 = vmatmul.mubr.f32.gmra.mxu0 %v149_v27  ;;  %1534 = vmatprep.subr.mxu0 %v496_v43 }
  0x81   :  { %1476 = vmatprep.mubr.f32.mxu0 %v150_v28  ;;  %1535 = vmatpush3.msra.mxu0 %v496_v43 }
  0x82   :  { %1536 = vmatprep.subr.mxu0 %v495_v11 }
  0x83   :  { %1537 = vmatpush3.msra.mxu0 %v495_v11  ;;  %v793_v11 = vld [vmem:[#allocation10 + $0x68] sm:$0xff] }
  0x84   :  { %1477 = vmatmul.mubr.f32.gmra.mxu0 %v151_v29  ;;  %1538 = vmatprep.subr.mxu0 %v494_v12 }
  0x85   :  { %1479 = vmatprep.mubr.f32.mxu0 %v152_v30  ;;  %1539 = vmatpush3.msra.mxu0 %v494_v12  ;;  %v792_v12 = vld [vmem:[#allocation10 + $0x60] sm:$0xff] }
  0x86   :  { %1540 = vmatprep.subr.mxu0 %v493_v13 }
  0x87   :  { %1541 = vmatpush3.msra.mxu0 %v493_v13  ;;  %v791_v13 = vld [vmem:[#allocation10 + $0x58] sm:$0xff] }
  0x88   :  { %1480 = vmatmul.mubr.f32.gmra.mxu0 %v153_v31  ;;  %1542 = vmatprep.subr.mxu0 %v492_v14 }
  0x89   :  { %1543 = vmatpush3.msra.mxu0 %v492_v14  ;;  %v790_v14 = vld [vmem:[#allocation10 + $0x50] sm:$0xff] }
  0x8a   :  { %1544 = vmatprep.subr.mxu0 %v491_v15 }
  0x8b   :  { %1545 = vmatpush3.msra.mxu0 %v491_v15  ;;  %v789_v15 = vld [vmem:[#allocation10 + $0x48] sm:$0xff] }
 0x12c   :  { %v1460_v44 = vpop.f32.mrf.mxu0 }
 0x12e   :  { %v237_v45 = vpop.f32.mrf.mxu0 }
 0x12f   :  { %v316_v3 = vpack.c.bf16 %v1460_v44, %v237_v45 }
 0x130   :  { %v1463_v46 = vpop.f32.mrf.mxu0 }
 0x132   :  { %v247_v47 = vpop.f32.mrf.mxu0 }
 0x133   :  { %v317_v2 = vpack.c.bf16 %v1463_v46, %v247_v47 }
 0x134   :  { %v1466_v48 = vpop.f32.mrf.mxu0 }
 0x136   :  { %v257_v49 = vpop.f32.mrf.mxu0 }
 0x137   :  { %v318_v1 = vpack.c.bf16 %v1466_v48, %v257_v49 }
 0x138   :  { %v1469_v50 = vpop.f32.mrf.mxu0 }
 0x13a   :  { %v267_v51 = vpop.f32.mrf.mxu0 }
 0x13b   :  { %v319_v0 = vpack.c.bf16 %v1469_v50, %v267_v51 }
 0x13c   :  { %v1472_v52 = vpop.f32.mrf.mxu0 }
 0x13e   :  { %v277_v53 = vpop.f32.mrf.mxu0 }
 0x13f   :  { %v320_v63 = vpack.c.bf16 %v1472_v52, %v277_v53 }
 0x140   :  { %v1475_v54 = vpop.f32.mrf.mxu0 }
 0x142   :  { %v287_v55 = vpop.f32.mrf.mxu0 }
 0x143   :  { %v321_v62 = vpack.c.bf16 %v1475_v54, %v287_v55 }
 0x144   :  { %v1478_v56 = vpop.f32.mrf.mxu0 }
 0x146   :  { %v297_v57 = vpop.f32.mrf.mxu0 }
 0x147   :  { %v322_v61 = vpack.c.bf16 %v1478_v56, %v297_v57 }
 0x148   :  { %v1481_v58 = vpop.f32.mrf.mxu0 }
 0x14a   :  { %v307_v59 = vpop.f32.mrf.mxu0 }
 0x14b   :  { %v323_v60 = vpack.c.bf16 %v1481_v58, %v307_v59 }
 0x14d   :  { %1482 = vmatprep.subr.bf16.mxu1 %v323_v60 }
 0x14e   :  { %1483 = vmatpush3.bf16.msra.mxu1 %v323_v60 }
 0x14f   :  { %1484 = vmatprep.subr.bf16.mxu1 %v322_v61 }
 0x152   :  { %1485 = vmatpush3.bf16.msra.mxu1 %v322_v61 }
 0x153   :  { %1486 = vmatprep.subr.bf16.mxu1 %v321_v62 }
 0x156   :  { %1487 = vmatpush3.bf16.msra.mxu1 %v321_v62 }
 0x157   :  { %1488 = vmatprep.subr.bf16.mxu1 %v320_v63 }
 0x15a   :  { %1489 = vmatpush3.bf16.msra.mxu1 %v320_v63 }
 0x15b   :  { %1490 = vmatprep.subr.bf16.mxu1 %v319_v0 }
 0x15e   :  { %1491 = vmatpush3.bf16.msra.mxu1 %v319_v0 }
 0x15f   :  { %1492 = vmatprep.subr.bf16.mxu1 %v318_v1 }
 0x162   :  { %1493 = vmatpush3.bf16.msra.mxu1 %v318_v1 }
 0x163   :  { %1494 = vmatprep.subr.bf16.mxu1 %v317_v2 }
 0x166   :  { %1495 = vmatpush3.bf16.msra.mxu1 %v317_v2  ;;  %v795_v2 = vld [vmem:[#allocation10 + $0x78] sm:$0xff] }
 0x167   :  { %1496 = vmatprep.subr.bf16.mxu1 %v316_v3  ;;  %1602 = vmatprep.subr.mxu0 %v795_v2 }
 0x16a   :  { %1497 = vmatpush3.bf16.msra.mxu1 %v316_v3  ;;  %v794_v3 = vld [vmem:[#allocation10 + $0x70] sm:$0xff] }
 0x16d   :  { %1499 = vmatmul.mubr.bf16.vlgmr.msra.gmra.mxu1 %v2040_v4 }
 0x16e   :  { %1502 = vmatprep.mubr.bf16.mxu1 %v2042_v5 }
 0x175   :  { %1503 = vmatmul.mubr.bf16.gmra.mxu1 %v2046_v6 }
 0x176   :  { %1506 = vmatprep.mubr.bf16.mxu1 %v2048_v7 }
 0x17d   :  { %1507 = vmatmul.mubr.bf16.gmra.mxu1 %v2052_v8 }
 0x17e   :  { %1510 = vmatprep.mubr.bf16.mxu1 %v2054_v9 }
 0x185   :  { %1511 = vmatmul.mubr.bf16.gmra.mxu1 %v2058_v10 }
 0x186   :  { %1586 = vmatprep.mubr.bf16.mxu1 %v2037_v32 }
 0x22d   :  { %v1500_v16 = vpop.f32.mrf.mxu1 }
 0x22e   :  { %v421_v22 = vadd.f32 %v1500_v16, %v1236_v17  ;;  %v788_v16 = vld [vmem:[#allocation10 + $0x40] sm:$0xff] }
 0x22f   :  { %v412_v18 = vpop.f32.mrf.mxu1 }
 0x230   :  { %v413_v19 = vadd.f32 %v1236_v17, %v412_v18  ;;  %v477_v28 = vmax.f32 %v421_v22, 0.0  ;;  %v786_v18 = vld [vmem:[#allocation10 + $0x30] sm:$0xff] }
 0x231   :  { %v1501_v20 = vpop.f32.mrf.mxu1 }
 0x232   :  { %v475_v21 = vmax.f32 %v413_v19, 0.0  ;;  %v424_v26 = vadd.f32 %v1501_v20, %v1236_v17  ;;  %v785_v19 = vld [vmem:[#allocation10 + $0x28] sm:$0xff] }
 0x233   :  { %v415_v23 = vpop.f32.mrf.mxu1 }
 0x234   :  { %v416_v24 = vadd.f32 %v1236_v17, %v415_v23  ;;  %1546 = vmatprep.mubr.f32.mxu0 %v475_v21  ;;  %v478_v33 = vmax.f32 %v424_v26, 0.0 }
 0x235   :  { %v1504_v25 = vpop.f32.mrf.mxu1 }
 0x236   :  { %v476_v27 = vmax.f32 %v416_v24, 0.0  ;;  %v437_v35 = vadd.f32 %v1504_v25, %v1236_v17 }
 0x237   :  { %v428_v29 = vpop.f32.mrf.mxu1 }
 0x238   :  { %v429_v30 = vadd.f32 %v1236_v17, %v428_v29  ;;  %1547 = vmatmul.mubr.f32.vlgmr.msra.gmra.mxu0 %v476_v27  ;;  %v481_v41 = vmax.f32 %v437_v35, 0.0 }
 0x239   :  { %v1505_v31 = vpop.f32.mrf.mxu1  ;;  %1549 = vmatprep.mubr.f32.mxu0 %v477_v28  ;;  %1603 = vmatpush3.msra.mxu0 %v795_v2 }
 0x23a   :  { %v479_v34 = vmax.f32 %v429_v30, 0.0  ;;  %v440_v39 = vadd.f32 %v1505_v31, %v1236_v17  ;;  %1604 = vmatprep.subr.mxu0 %v794_v3 }
 0x23b   :  { %v431_v36 = vpop.f32.mrf.mxu1  ;;  %1605 = vmatpush3.msra.mxu0 %v794_v3 }
 0x23c   :  { %v432_v37 = vadd.f32 %v1236_v17, %v431_v36  ;;  %1550 = vmatmul.mubr.f32.gmra.mxu0 %v478_v33  ;;  %v482_v45 = vmax.f32 %v440_v39, 0.0  ;;  %1606 = vmatprep.subr.mxu0 %v793_v11 }
 0x23d   :  { %v1508_v38 = vpop.f32.mrf.mxu1  ;;  %1552 = vmatprep.mubr.f32.mxu0 %v479_v34  ;;  %1607 = vmatpush3.msra.mxu0 %v793_v11 }
 0x23e   :  { %v480_v40 = vmax.f32 %v432_v37, 0.0  ;;  %v453_v47 = vadd.f32 %v1508_v38, %v1236_v17  ;;  %1608 = vmatprep.subr.mxu0 %v792_v12 }
 0x23f   :  { %v444_v42 = vpop.f32.mrf.mxu1  ;;  %1609 = vmatpush3.msra.mxu0 %v792_v12 }
 0x240   :  { %v445_v43 = vadd.f32 %v1236_v17, %v444_v42  ;;  %1553 = vmatmul.mubr.f32.gmra.mxu0 %v480_v40  ;;  %v485_v53 = vmax.f32 %v453_v47, 0.0  ;;  %1610 = vmatprep.subr.mxu0 %v791_v13  ;;  %v782_v47 = vld [vmem:[#allocation10 + $0x10] sm:$0xff] }
 0x241   :  { %v1509_v44 = vpop.f32.mrf.mxu1  ;;  %1555 = vmatprep.mubr.f32.mxu0 %v481_v41  ;;  %1611 = vmatpush3.msra.mxu0 %v791_v13 }
 0x242   :  { %v483_v46 = vmax.f32 %v445_v43, 0.0  ;;  %v456_v51 = vadd.f32 %v1509_v44, %v1236_v17  ;;  %1612 = vmatprep.subr.mxu0 %v790_v14 }
 0x243   :  { %v447_v48 = vpop.f32.mrf.mxu1  ;;  %1613 = vmatpush3.msra.mxu0 %v790_v14 }
 0x244   :  { %v448_v49 = vadd.f32 %v1236_v17, %v447_v48  ;;  %1556 = vmatmul.mubr.f32.gmra.mxu0 %v482_v45  ;;  %v486_v57 = vmax.f32 %v456_v51, 0.0  ;;  %1614 = vmatprep.subr.mxu0 %v789_v15  ;;  %v784_v45 = vld [vmem:[#allocation10 + $0x20] sm:$0xff]  ;;  %v781_v48 = vld [vmem:[#allocation10 + $0x8] sm:$0xff] }
 0x245   :  { %v1512_v50 = vpop.f32.mrf.mxu1  ;;  %1558 = vmatprep.mubr.f32.mxu0 %v483_v46  ;;  %1615 = vmatpush3.msra.mxu0 %v789_v15  ;;  %v783_v46 = vld [vmem:[#allocation10 + $0x18] sm:$0xff] }
 0x246   :  { %v484_v52 = vmax.f32 %v448_v49, 0.0  ;;  %v469_v59 = vadd.f32 %v1512_v50, %v1236_v17  ;;  %1616 = vmatprep.subr.mxu0 %v788_v16  ;;  %v780_v49 = vld [vmem:[#allocation10] sm:$0xff] }
 0x247   :  { %v460_v54 = vpop.f32.mrf.mxu1  ;;  %1617 = vmatpush3.msra.mxu0 %v788_v16 }
 0x248   :  { %v461_v55 = vadd.f32 %v1236_v17, %v460_v54  ;;  %1559 = vmatmul.mubr.f32.gmra.mxu0 %v484_v52  ;;  %v489_v0 = vmax.f32 %v469_v59, 0.0 }
 0x249   :  { %v1513_v56 = vpop.f32.mrf.mxu1  ;;  %1561 = vmatprep.mubr.f32.mxu0 %v485_v53 }
 0x24a   :  { %v487_v58 = vmax.f32 %v461_v55, 0.0  ;;  %v472_v62 = vadd.f32 %v1513_v56, %v1236_v17 }
 0x24b   :  { %v463_v60 = vpop.f32.mrf.mxu1 }
 0x24c   :  { %v464_v61 = vadd.f32 %v1236_v17, %v463_v60  ;;  %1562 = vmatmul.mubr.f32.gmra.mxu0 %v486_v57  ;;  %v490_v1 = vmax.f32 %v472_v62, 0.0  ;;  %v787_v17 = vld [vmem:[#allocation10 + $0x38] sm:$0xff] }
 0x24d   :  { %1564 = vmatprep.mubr.f32.mxu0 %v487_v58  ;;  %1618 = vmatprep.subr.mxu0 %v787_v17 }
 0x24e   :  { %v488_v63 = vmax.f32 %v464_v61, 0.0  ;;  %1619 = vmatpush3.msra.mxu0 %v787_v17 }
 0x24f   :  { %1620 = vmatprep.subr.mxu0 %v786_v18 }
 0x250   :  { %1565 = vmatmul.mubr.f32.gmra.mxu0 %v488_v63 }
 0x251   :  { %1567 = vmatprep.mubr.f32.mxu0 %v489_v0  ;;  %1621 = vmatpush3.msra.mxu0 %v786_v18 }
 0x252   :  { %1622 = vmatprep.subr.mxu0 %v785_v19 }
 0x253   :  { %1623 = vmatpush3.msra.mxu0 %v785_v19 }
 0x254   :  { %1568 = vmatmul.mubr.f32.gmra.mxu0 %v490_v1  ;;  %1624 = vmatprep.subr.mxu0 %v784_v45 }
 0x255   :  { %1625 = vmatpush3.msra.mxu0 %v784_v45 }
 0x256   :  { %1626 = vmatprep.subr.mxu0 %v783_v46 }
 0x257   :  { %1627 = vmatpush3.msra.mxu0 %v783_v46 }
 0x258   :  { %1628 = vmatprep.subr.mxu0 %v782_v47 }
 0x259   :  { %1629 = vmatpush3.msra.mxu0 %v782_v47 }
 0x25a   :  { %1630 = vmatprep.subr.mxu0 %v781_v48 }
 0x25b   :  { %1631 = vmatpush3.msra.mxu0 %v781_v48 }
 0x25c   :  { %1632 = vmatprep.subr.mxu0 %v780_v49 }
 0x25d   :  { %1633 = vmatpush3.msra.mxu0 %v780_v49 }
 0x2f8   :  { %v1548_v20 = vpop.f32.mrf.mxu0 }
 0x2fa   :  { %v574_v21 = vpop.f32.mrf.mxu0 }
 0x2fb   :  { %v653_v44 = vpack.c.bf16 %v1548_v20, %v574_v21 }
 0x2fc   :  { %v1551_v22 = vpop.f32.mrf.mxu0 }
 0x2fe   :  { %v584_v23 = vpop.f32.mrf.mxu0 }
 0x2ff   :  { %v654_v43 = vpack.c.bf16 %v1551_v22, %v584_v23 }
 0x300   :  { %v1554_v24 = vpop.f32.mrf.mxu0 }
 0x302   :  { %v594_v25 = vpop.f32.mrf.mxu0 }
 0x303   :  { %v655_v42 = vpack.c.bf16 %v1554_v24, %v594_v25 }
 0x304   :  { %v1557_v26 = vpop.f32.mrf.mxu0 }
 0x306   :  { %v604_v27 = vpop.f32.mrf.mxu0 }
 0x307   :  { %v656_v41 = vpack.c.bf16 %v1557_v26, %v604_v27 }
 0x308   :  { %v1560_v28 = vpop.f32.mrf.mxu0 }
 0x30a   :  { %v614_v29 = vpop.f32.mrf.mxu0 }
 0x30b   :  { %v657_v40 = vpack.c.bf16 %v1560_v28, %v614_v29 }
 0x30c   :  { %v1563_v30 = vpop.f32.mrf.mxu0 }
 0x30e   :  { %v624_v31 = vpop.f32.mrf.mxu0 }
 0x30f   :  { %v658_v39 = vpack.c.bf16 %v1563_v30, %v624_v31 }
 0x310   :  { %v1566_v33 = vpop.f32.mrf.mxu0 }
 0x312   :  { %v634_v34 = vpop.f32.mrf.mxu0 }
 0x313   :  { %v659_v38 = vpack.c.bf16 %v1566_v33, %v634_v34 }
 0x314   :  { %v1569_v35 = vpop.f32.mrf.mxu0 }
 0x316   :  { %v644_v36 = vpop.f32.mrf.mxu0 }
 0x317   :  { %v660_v37 = vpack.c.bf16 %v1569_v35, %v644_v36 }
 0x319   :  { %1570 = vmatprep.subr.bf16.mxu1 %v660_v37 }
 0x31a   :  { %1571 = vmatpush3.bf16.msra.mxu1 %v660_v37 }
 0x31b   :  { %1572 = vmatprep.subr.bf16.mxu1 %v659_v38 }
 0x31e   :  { %1573 = vmatpush3.bf16.msra.mxu1 %v659_v38 }
 0x31f   :  { %1574 = vmatprep.subr.bf16.mxu1 %v658_v39 }
 0x322   :  { %1575 = vmatpush3.bf16.msra.mxu1 %v658_v39 }
 0x323   :  { %1576 = vmatprep.subr.bf16.mxu1 %v657_v40 }
 0x326   :  { %1577 = vmatpush3.bf16.msra.mxu1 %v657_v40 }
 0x327   :  { %1578 = vmatprep.subr.bf16.mxu1 %v656_v41 }
 0x32a   :  { %1579 = vmatpush3.bf16.msra.mxu1 %v656_v41 }
 0x32b   :  { %1580 = vmatprep.subr.bf16.mxu1 %v655_v42 }
 0x32e   :  { %1581 = vmatpush3.bf16.msra.mxu1 %v655_v42 }
 0x32f   :  { %1582 = vmatprep.subr.bf16.mxu1 %v654_v43 }
 0x332   :  { %1583 = vmatpush3.bf16.msra.mxu1 %v654_v43 }
 0x333   :  { %1584 = vmatprep.subr.bf16.mxu1 %v653_v44 }
 0x336   :  { %1585 = vmatpush3.bf16.msra.mxu1 %v653_v44 }
 0x339   :  { %1587 = vmatmul.mubr.bf16.vlgmr.msra.gmra.mxu1 %v2040_v4 }
 0x33a   :  { %1590 = vmatprep.mubr.bf16.mxu1 %v2042_v5 }
 0x341   :  { %1591 = vmatmul.mubr.bf16.gmra.mxu1 %v2046_v6 }
 0x342   :  { %1594 = vmatprep.mubr.bf16.mxu1 %v2048_v7 }
 0x349   :  { %1595 = vmatmul.mubr.bf16.gmra.mxu1 %v2052_v8 }
 0x34a   :  { %1598 = vmatprep.mubr.bf16.mxu1 %v2054_v9 }
 0x351   :  { %1599 = vmatmul.mubr.bf16.gmra.mxu1 %v2058_v10 }
 0x352   :  { %1674 = vmatprep.mubr.bf16.mxu1 %v2037_v32  ;;  %v1245_v32 = vld [vmem:[%s2134_s5] ss:$0 sm:$0xff] }
 0x3f9   :  { %v1588_v50 = vpop.f32.mrf.mxu1 }
 0x3fa   :  { %v710_v55 = vadd.f32 %v1588_v50, %v1245_v32 }
 0x3fb   :  { %v701_v51 = vpop.f32.mrf.mxu1 }
 0x3fc   :  { %v702_v52 = vadd.f32 %v1245_v32, %v701_v51  ;;  %v766_v61 = vmax.f32 %v710_v55, 0.0 }
 0x3fd   :  { %v1589_v53 = vpop.f32.mrf.mxu1 }
 0x3fe   :  { %v764_v54 = vmax.f32 %v702_v52, 0.0  ;;  %v713_v59 = vadd.f32 %v1589_v53, %v1245_v32 }
 0x3ff   :  { %v704_v56 = vpop.f32.mrf.mxu1 }
 0x400   :  { %v705_v57 = vadd.f32 %v1245_v32, %v704_v56  ;;  %1634 = vmatprep.mubr.f32.mxu0 %v764_v54  ;;  %v767_v1 = vmax.f32 %v713_v59, 0.0 }
 0x401   :  { %v1592_v58 = vpop.f32.mrf.mxu1 }
 0x402   :  { %v765_v60 = vmax.f32 %v705_v57, 0.0  ;;  %v726_v3 = vadd.f32 %v1592_v58, %v1245_v32 }
 0x403   :  { %v717_v62 = vpop.f32.mrf.mxu1 }
 0x404   :  { %v718_v63 = vadd.f32 %v1245_v32, %v717_v62  ;;  %1635 = vmatmul.mubr.f32.vlgmr.msra.gmra.mxu0 %v765_v60  ;;  %v770_v16 = vmax.f32 %v726_v3, 0.0  ;;  %v1131_v3 = vld [vmem:[#allocation11 + $0x38] sm:$0xff] }
 0x405   :  { %v1593_v0 = vpop.f32.mrf.mxu1  ;;  %1637 = vmatprep.mubr.f32.mxu0 %v766_v61 }
 0x406   :  { %v768_v2 = vmax.f32 %v718_v63, 0.0  ;;  %v729_v14 = vadd.f32 %v1593_v0, %v1245_v32 }
 0x407   :  { %v720_v11 = vpop.f32.mrf.mxu1 }
 0x408   :  { %v721_v12 = vadd.f32 %v1245_v32, %v720_v11  ;;  %1638 = vmatmul.mubr.f32.gmra.mxu0 %v767_v1  ;;  %v771_v20 = vmax.f32 %v729_v14, 0.0  ;;  %v1941_v1 = vmov 0.0   ;;  %v1130_v11 = vld [vmem:[#allocation11 + $0x30] sm:$0xff]  ;;  %v1127_v14 = vld [vmem:[#allocation11 + $0x18] sm:$0xff] }
 0x409   :  { %v1596_v13 = vpop.f32.mrf.mxu1  ;;  %1640 = vmatprep.mubr.f32.mxu0 %v768_v2  ;;  %1690 = vmatprep.subr.mxu0 %v1941_v1  ;;  %v1132_v2 = vld [vmem:[#allocation11 + $0x40] sm:$0xff] }
 0x40a   :  { %v769_v15 = vmax.f32 %v721_v12, 0.0  ;;  %v742_v22 = vadd.f32 %v1596_v13, %v1245_v32  ;;  %v1129_v12 = vld [vmem:[#allocation11 + $0x28] sm:$0xff]  ;;  %v1128_v13 = vld [vmem:[#allocation11 + $0x20] sm:$0xff] }
 0x40b   :  { %v733_v17 = vpop.f32.mrf.mxu1 }
 0x40c   :  { %v734_v18 = vadd.f32 %v1245_v32, %v733_v17  ;;  %1641 = vmatmul.mubr.f32.gmra.mxu0 %v769_v15  ;;  %v774_v28 = vmax.f32 %v742_v22, 0.0  ;;  %v1126_v15 = vld [vmem:[#allocation11 + $0x10] sm:$0xff] }
 0x40d   :  { %v1597_v19 = vpop.f32.mrf.mxu1  ;;  %1643 = vmatprep.mubr.f32.mxu0 %v770_v16  ;;  %v1125_v16 = vld [vmem:[#allocation11 + $0x8] sm:$0xff] }
 0x40e   :  { %v772_v21 = vmax.f32 %v734_v18, 0.0  ;;  %v745_v26 = vadd.f32 %v1597_v19, %v1245_v32 }
 0x40f   :  { %v736_v23 = vpop.f32.mrf.mxu1 }
 0x410   :  { %v737_v24 = vadd.f32 %v1245_v32, %v736_v23  ;;  %1644 = vmatmul.mubr.f32.gmra.mxu0 %v771_v20  ;;  %v775_v33 = vmax.f32 %v745_v26, 0.0 }
 0x411   :  { %v1600_v25 = vpop.f32.mrf.mxu1  ;;  %1646 = vmatprep.mubr.f32.mxu0 %v772_v21 }
 0x412   :  { %v773_v27 = vmax.f32 %v737_v24, 0.0  ;;  %v758_v35 = vadd.f32 %v1600_v25, %v1245_v32 }
 0x413   :  { %v749_v29 = vpop.f32.mrf.mxu1 }
 0x414   :  { %v750_v30 = vadd.f32 %v1245_v32, %v749_v29  ;;  %1647 = vmatmul.mubr.f32.gmra.mxu0 %v773_v27  ;;  %v778_v40 = vmax.f32 %v758_v35, 0.0 }
 0x415   :  { %v1601_v31 = vpop.f32.mrf.mxu1  ;;  %1649 = vmatprep.mubr.f32.mxu0 %v774_v28 }
 0x416   :  { %v776_v34 = vmax.f32 %v750_v30, 0.0  ;;  %v761_v38 = vadd.f32 %v1601_v31, %v1245_v32  ;;  %v1246_v31 = vld [vmem:[%s2136_s7] ss:$0 sm:$0xff] }
 0x417   :  { %v752_v36 = vpop.f32.mrf.mxu1 }
 0x418   :  { %v753_v37 = vadd.f32 %v1245_v32, %v752_v36  ;;  %1650 = vmatmul.mubr.f32.gmra.mxu0 %v775_v33  ;;  %v779_v41 = vmax.f32 %v761_v38, 0.0 }
 0x419   :  { %1652 = vmatprep.mubr.f32.mxu0 %v776_v34 }
 0x41a   :  { %v777_v39 = vmax.f32 %v753_v37, 0.0 }
 0x41c   :  { %1653 = vmatmul.mubr.f32.gmra.mxu0 %v777_v39 }
 0x41d   :  { %1655 = vmatprep.mubr.f32.mxu0 %v778_v40 }
 0x420   :  { %1656 = vmatmul.mubr.f32.gmra.mxu0 %v779_v41 }
 0x421   :  { %1722 = vmatprep.mubr.msk.f32.mxu0 %vm1942_vm0, %v1941_v1 }
 0x4c4   :  { %v1636_v42 = vpop.f32.mrf.mxu0 }
 0x4c6   :  { %v863_v43 = vpop.f32.mrf.mxu0 }
 0x4c7   :  { %v942_v0 = vpack.c.bf16 %v1636_v42, %v863_v43 }
 0x4c8   :  { %v1639_v44 = vpop.f32.mrf.mxu0 }
 0x4ca   :  { %v873_v45 = vpop.f32.mrf.mxu0 }
 0x4cb   :  { %v943_v63 = vpack.c.bf16 %v1639_v44, %v873_v45 }
 0x4cc   :  { %v1642_v46 = vpop.f32.mrf.mxu0 }
 0x4ce   :  { %v883_v47 = vpop.f32.mrf.mxu0 }
 0x4cf   :  { %v944_v62 = vpack.c.bf16 %v1642_v46, %v883_v47 }
 0x4d0   :  { %v1645_v48 = vpop.f32.mrf.mxu0 }
 0x4d2   :  { %v893_v49 = vpop.f32.mrf.mxu0 }
 0x4d3   :  { %v945_v61 = vpack.c.bf16 %v1645_v48, %v893_v49 }
 0x4d4   :  { %v1648_v50 = vpop.f32.mrf.mxu0 }
 0x4d6   :  { %v903_v51 = vpop.f32.mrf.mxu0 }
 0x4d7   :  { %v946_v60 = vpack.c.bf16 %v1648_v50, %v903_v51  ;;  %v1053_v51 = vld [vmem:[%s2137_s8] sm:$0xff]  ;;  %s1901_s8 = scalar_lea.vmem %s1225_s14, 128 }
 0x4d8   :  { %v1651_v52 = vpop.f32.mrf.mxu0  ;;  %p1902_p2 = scmp.ne.s32.totalorder %s1225_s14, %s1901_s8  ;;  %p1907_p4 = scmp.lt.s32.totalorder %s1901_s8, %s1901_s8 }
 0x4da   :  { %v913_v53 = vpop.f32.mrf.mxu0  ;;  %p1908_p5 = por %p1907_p4, %p1906_p3 }
 0x4db   :  { %v947_v59 = vpack.c.bf16 %v1651_v52, %v913_v53  ;;  %v1124_v52 = vld [vmem:[#allocation11] sm:$0xff] }
 0x4dc   :  { %v1654_v54 = vpop.f32.mrf.mxu0  ;;  %p1909_p6 = pnand %p1908_p5, %p1902_p2 }
 0x4de   :  { %v923_v32 = vpop.f32.mrf.mxu0 }
 0x4df   :  { %v948_v58 = vpack.c.bf16 %v1654_v54, %v923_v32  ;;  %v1247_v32 = vld [vmem:[%s2139_s10] ss:$0 sm:$0xff] }
 0x4e0   :  { %v1657_v55 = vpop.f32.mrf.mxu0 }
 0x4e2   :  { %v933_v56 = vpop.f32.mrf.mxu0 }
 0x4e3   :  { %v949_v57 = vpack.c.bf16 %v1657_v55, %v933_v56 }
 0x4e5   :  { %1658 = vmatprep.subr.bf16.mxu1 %v949_v57 }
 0x4e6   :  { %1659 = vmatpush3.bf16.msra.mxu1 %v949_v57 }
 0x4e7   :  { %1660 = vmatprep.subr.bf16.mxu1 %v948_v58 }
 0x4ea   :  { %1661 = vmatpush3.bf16.msra.mxu1 %v948_v58 }
 0x4eb   :  { %1662 = vmatprep.subr.bf16.mxu1 %v947_v59 }
 0x4ee   :  { %1663 = vmatpush3.bf16.msra.mxu1 %v947_v59 }
 0x4ef   :  { %1664 = vmatprep.subr.bf16.mxu1 %v946_v60 }
 0x4f2   :  { %1665 = vmatpush3.bf16.msra.mxu1 %v946_v60 }
 0x4f3   :  { %1666 = vmatprep.subr.bf16.mxu1 %v945_v61 }
 0x4f6   :  { %1667 = vmatpush3.bf16.msra.mxu1 %v945_v61 }
 0x4f7   :  { %1668 = vmatprep.subr.bf16.mxu1 %v944_v62 }
 0x4fa   :  { %1669 = vmatpush3.bf16.msra.mxu1 %v944_v62 }
 0x4fb   :  { %1670 = vmatprep.subr.bf16.mxu1 %v943_v63 }
 0x4fe   :  { %1671 = vmatpush3.bf16.msra.mxu1 %v943_v63 }
 0x4ff   :  { %1672 = vmatprep.subr.bf16.mxu1 %v942_v0 }
 0x502   :  { %1673 = vmatpush3.bf16.msra.mxu1 %v942_v0 }
 0x503   :  { %1725 = vmatprep.subr.mxu1 %v1941_v1 }
 0x505   :  { %1675 = vmatmul.mubr.bf16.vlgmr.msra.gmra.mxu1 %v2040_v4  ;;  %v1139_v4 = vld [vmem:[#allocation11 + $0x78] sm:$0xff] }
 0x506   :  { %1678 = vmatprep.mubr.bf16.mxu1 %v2042_v5  ;;  %v1138_v5 = vld [vmem:[#allocation11 + $0x70] sm:$0xff]  ;;  %1726 = vmatpush3.msra.mxu1 %v1139_v4 }
 0x507   :  { %1727 = vmatprep.subr.mxu1 %v1941_v1 }
 0x508   :  { %1728 = vmatpush3.msra.mxu1 %v1138_v5 }
 0x509   :  { %1729 = vmatprep.subr.mxu1 %v1941_v1 }
 0x50d   :  { %1679 = vmatmul.mubr.bf16.gmra.mxu1 %v2046_v6  ;;  %v1137_v6 = vld [vmem:[#allocation11 + $0x68] sm:$0xff] }
 0x50e   :  { %1682 = vmatprep.mubr.bf16.mxu1 %v2048_v7  ;;  %v1136_v7 = vld [vmem:[#allocation11 + $0x60] sm:$0xff]  ;;  %1730 = vmatpush3.msra.mxu1 %v1137_v6 }
 0x50f   :  { %1731 = vmatprep.subr.mxu1 %v1941_v1 }
 0x510   :  { %1732 = vmatpush3.msra.mxu1 %v1136_v7 }
 0x511   :  { %1733 = vmatprep.subr.mxu1 %v1941_v1 }
 0x515   :  { %1683 = vmatmul.mubr.bf16.gmra.mxu1 %v2052_v8  ;;  %v1135_v8 = vld [vmem:[#allocation11 + $0x58] sm:$0xff] }
 0x516   :  { %1686 = vmatprep.mubr.bf16.mxu1 %v2054_v9  ;;  %v1134_v9 = vld [vmem:[#allocation11 + $0x50] sm:$0xff]  ;;  %1734 = vmatpush3.msra.mxu1 %v1135_v8 }
 0x517   :  { %1735 = vmatprep.subr.mxu1 %v1941_v1 }
 0x518   :  { %1736 = vmatpush3.msra.mxu1 %v1134_v9 }
 0x519   :  { %1737 = vmatprep.subr.mxu1 %v1941_v1 }
 0x51d   :  { %1687 = vmatmul.mubr.bf16.gmra.mxu1 %v2058_v10  ;;  %v1133_v10 = vld [vmem:[#allocation11 + $0x48] sm:$0xff] }
 0x51e   :  { %1757 = vmatprep.mubr.msk.f32.mxu1 %vm1942_vm0, %v1941_v1  ;;  %1738 = vmatpush3.msra.mxu1 %v1133_v10 }
 0x51f   :  { %1739 = vmatprep.subr.mxu1 %v1941_v1 }
 0x520   :  { %1740 = vmatpush3.msra.mxu1 %v1132_v2 }
 0x521   :  { %1741 = vmatprep.subr.mxu1 %v1941_v1 }
 0x522   :  { %1742 = vmatpush3.msra.mxu1 %v1131_v3 }
 0x523   :  { %1743 = vmatprep.subr.mxu1 %v1941_v1 }
 0x524   :  { %1744 = vmatpush3.msra.mxu1 %v1130_v11 }
 0x525   :  { %1745 = vmatprep.subr.mxu1 %v1941_v1 }
 0x526   :  { %1746 = vmatpush3.msra.mxu1 %v1129_v12 }
 0x527   :  { %1747 = vmatprep.subr.mxu1 %v1941_v1 }
 0x528   :  { %1748 = vmatpush3.msra.mxu1 %v1128_v13 }
 0x529   :  { %1749 = vmatprep.subr.mxu1 %v1941_v1 }
 0x52a   :  { %1750 = vmatpush3.msra.mxu1 %v1127_v14 }
 0x52b   :  { %1751 = vmatprep.subr.mxu1 %v1941_v1 }
 0x52c   :  { %1752 = vmatpush3.msra.mxu1 %v1126_v15 }
 0x52d   :  { %1753 = vmatprep.subr.mxu1 %v1941_v1 }
 0x52e   :  { %1754 = vmatpush3.msra.mxu1 %v1125_v16 }
 0x52f   :  { %1755 = vmatprep.subr.mxu1 %v1941_v1 }
 0x530   :  { %1756 = vmatpush3.msra.mxu1 %v1124_v52 }
 0x5c5   :  { %v1676_v17 = vpop.f32.mrf.mxu1 }
 0x5c6   :  { %v999_v48 = vadd.f32 %v1676_v17, %v1246_v31 }
 0x5c7   :  { %v990_v18 = vpop.f32.mrf.mxu1 }
 0x5c8   :  { %v991_v50 = vadd.f32 %v1246_v31, %v990_v18 }
 0x5c9   :  { %v1677_v19 = vpop.f32.mrf.mxu1 }
 0x5ca   :  { %v1002_v47 = vadd.f32 %v1677_v19, %v1246_v31 }
 0x5cb   :  { %v993_v20 = vpop.f32.mrf.mxu1 }
 0x5cc   :  { %v994_v49 = vadd.f32 %v1246_v31, %v993_v20 }
 0x5cd   :  { %v1680_v21 = vpop.f32.mrf.mxu1 }
 0x5ce   :  { %v1015_v44 = vadd.f32 %v1680_v21, %v1246_v31 }
 0x5cf   :  { %v1006_v22 = vpop.f32.mrf.mxu1 }
 0x5d0   :  { %v1007_v46 = vadd.f32 %v1246_v31, %v1006_v22 }
 0x5d1   :  { %v1681_v23 = vpop.f32.mrf.mxu1 }
 0x5d2   :  { %v1018_v43 = vadd.f32 %v1681_v23, %v1246_v31 }
 0x5d3   :  { %v1009_v24 = vpop.f32.mrf.mxu1 }
 0x5d4   :  { %v1010_v45 = vadd.f32 %v1246_v31, %v1009_v24 }
 0x5d5   :  { %v1684_v25 = vpop.f32.mrf.mxu1 }
 0x5d6   :  { %v1031_v40 = vadd.f32 %v1684_v25, %v1246_v31 }
 0x5d7   :  { %v1022_v26 = vpop.f32.mrf.mxu1 }
 0x5d8   :  { %v1023_v42 = vadd.f32 %v1246_v31, %v1022_v26 }
 0x5d9   :  { %v1685_v27 = vpop.f32.mrf.mxu1 }
 0x5da   :  { %v1034_v39 = vadd.f32 %v1685_v27, %v1246_v31 }
 0x5db   :  { %v1025_v28 = vpop.f32.mrf.mxu1 }
 0x5dc   :  { %v1026_v41 = vadd.f32 %v1246_v31, %v1025_v28 }
 0x5dd   :  { %v1688_v29 = vpop.f32.mrf.mxu1 }
 0x5de   :  { %v1047_v36 = vadd.f32 %v1688_v29, %v1246_v31 }
 0x5df   :  { %v1038_v30 = vpop.f32.mrf.mxu1 }
 0x5e0   :  { %v1039_v38 = vadd.f32 %v1246_v31, %v1038_v30 }
 0x5e1   :  { %v1689_v33 = vpop.f32.mrf.mxu1 }
 0x5e2   :  { %v1050_v34 = vadd.f32 %v1689_v33, %v1246_v31 }
 0x5e3   :  { %v1041_v35 = vpop.f32.mrf.mxu1 }
 0x5e4   :  { %1691 = vmatpush3.msra.mxu0 %v1050_v34  ;;  %v1042_v37 = vadd.f32 %v1246_v31, %v1041_v35 }
 0x5e5   :  { %1692 = vmatprep.subr.mxu0 %v1941_v1 }
 0x5e6   :  { %1693 = vmatpush3.msra.mxu0 %v1047_v36 }
 0x5e7   :  { %1694 = vmatprep.subr.mxu0 %v1941_v1 }
 0x5e8   :  { %1695 = vmatpush3.msra.mxu0 %v1042_v37 }
 0x5e9   :  { %1696 = vmatprep.subr.mxu0 %v1941_v1 }
 0x5ea   :  { %1697 = vmatpush3.msra.mxu0 %v1039_v38 }
 0x5eb   :  { %1698 = vmatprep.subr.mxu0 %v1941_v1 }
 0x5ec   :  { %1699 = vmatpush3.msra.mxu0 %v1034_v39 }
 0x5ed   :  { %1700 = vmatprep.subr.mxu0 %v1941_v1 }
 0x5ee   :  { %1701 = vmatpush3.msra.mxu0 %v1031_v40 }
 0x5ef   :  { %1702 = vmatprep.subr.mxu0 %v1941_v1 }
 0x5f0   :  { %1703 = vmatpush3.msra.mxu0 %v1026_v41 }
 0x5f1   :  { %1704 = vmatprep.subr.mxu0 %v1941_v1 }
 0x5f2   :  { %1705 = vmatpush3.msra.mxu0 %v1023_v42 }
 0x5f3   :  { %1706 = vmatprep.subr.mxu0 %v1941_v1 }
 0x5f4   :  { %1707 = vmatpush3.msra.mxu0 %v1018_v43 }
 0x5f5   :  { %1708 = vmatprep.subr.mxu0 %v1941_v1 }
 0x5f6   :  { %1709 = vmatpush3.msra.mxu0 %v1015_v44 }
 0x5f7   :  { %1710 = vmatprep.subr.mxu0 %v1941_v1 }
 0x5f8   :  { %1711 = vmatpush3.msra.mxu0 %v1010_v45 }
 0x5f9   :  { %1712 = vmatprep.subr.mxu0 %v1941_v1 }
 0x5fa   :  { %1713 = vmatpush3.msra.mxu0 %v1007_v46 }
 0x5fb   :  { %1714 = vmatprep.subr.mxu0 %v1941_v1 }
 0x5fc   :  { %1715 = vmatpush3.msra.mxu0 %v1002_v47 }
 0x5fd   :  { %1716 = vmatprep.subr.mxu0 %v1941_v1 }
 0x5fe   :  { %1717 = vmatpush3.msra.mxu0 %v999_v48 }
 0x5ff   :  { %1718 = vmatprep.subr.mxu0 %v1941_v1 }
 0x600   :  { %1719 = vmatpush3.msra.mxu0 %v994_v49 }
 0x601   :  { %1720 = vmatprep.subr.mxu0 %v1941_v1 }
 0x602   :  { %1721 = vmatpush3.msra.mxu0 %v991_v50 }
 0x603   :  { %1723 = vmatmul.mubr.f32.vlgmr.msra.gmra.mxu0 %v1053_v51 }
 0x6c3   :  { %v1120_v53 = vpop.f32.mrf.mxu0 }
 0x6c4   :  { %1758 = vmatmul.mubr.f32.vlgmr.msra.gmra.mxu1 %v1120_v53 }
 0x6c5   :  { %v1724_v54 = vpop.f32.mrf.mxu0 }
 0x784   :  { %v1213_v55 = vpop.f32.mrf.mxu1 }
 0x785   :  { %v1214_v56 = vadd.f32 %v1247_v32, %v1213_v55 }
 0x786   :  { %v1759_v57 = vpop.f32.mrf.mxu1 }
 0x787   :  { %1217 = vst [vmem:[#allocation13] sm:$0xff] %v1214_v56 }
 0x788   :  { %1912 = shalt.err (!%p1909_p6)
}
 0x789   :  { %1227 = dma.vmem_to_hbm [thread:$0]  %s1225_s14, 128, %s2140_s11, [#allocation4]  }
 0x78a   :  { %1929 = dma.done.wait [#allocation4], 128  }
 0x78b   :  { %1930 = vsyncadd [#allocation4], 4294967168 }
 0x78c   :  { %1231 = vsyncpa [#allocation3], 1 }
 0x78d   :  { %1232 = vsyncpa [#allocation6], 1 }
 0x78e   :  { %1233 = vsyncpa [#allocation9], 1 }
 0x78f   :  { %1234 = vsyncpa [#allocation12], 1 }
 0x790   :  { %1235 = vsyncpa [#allocation4], 1 }

</bundles_post_ra>
